<compile_context>
chip_gen: v7x
topology: tpu7x:2x2x1
jax: 0.10.0
libtpu: 0.0.40
codegen_flags: <defaults>
</compile_context>

<pallas_src>
import math

import jax
import jax.numpy as jnp
from jax.experimental import pallas as pl
from jax.experimental.pallas import tpu as pltpu


def _tensorcores_per_device() -> int:
    """TensorCores a single Pallas call can shard a 'parallel' grid axis over.

    v5e / v6e expose 1 TC per chip; v4 / v5p / v7x expose 2 (megacore).
    Conservative default is 1 (correct everywhere, just no split).
    """
    try:
        kind = jax.devices()[0].device_kind.lower()
    except Exception:
        return 1
    if "v4" in kind or "v5p" in kind or "v7" in kind:
        return 2
    return 1


def _timestep_mlp_kernel(t_ref, emb_hbm, w1_ref, b1_ref, w2_ref, b2_ref,
                         o_ref, x_buf, copy_sems):
    """One grid step: gather embeddings, f_1 + SiLU (full width), f_2 slab."""
    B, _ = x_buf.shape
    n_time = emb_hbm.shape[0]

    # --- Fused embedding gather: B small HBM->VMEM row DMAs driven by the
    #     scalar-prefetched timestep indices.  Indices are clamped because an
    #     in-kernel DMA is an unchecked HBM read (PyTorch nn.Embedding would
    #     raise on out-of-range indices instead).
    copies = []
    for b in range(B):  # B is small & static -> unrolled at trace time
        idx = jnp.clip(t_ref[b], 0, n_time - 1)
        cp = pltpu.make_async_copy(emb_hbm.at[idx], x_buf.at[b], copy_sems.at[b])
        cp.start()
        copies.append(cp)
    for cp in copies:
        cp.wait()

    # --- f_1: (B, n_emb) @ (n_emb, n_out) on the MXU, bf16 operands, f32 acc.
    x = x_buf[...].astype(jnp.bfloat16)
    h = jnp.dot(x, w1_ref[...], preferred_element_type=jnp.float32)
    h = h + b1_ref[...].astype(jnp.float32)          # (1, n_out) broadcasts over B
    h = h * jax.nn.sigmoid(h)                        # SiLU in f32 (EUP exp, VPU mul)

    # --- f_2: this grid step / core produces one lane-dense, contiguous column
    #     slab of the output: (B, n_out) @ (n_out, n_half).
    o = jnp.dot(h.astype(jnp.bfloat16), w2_ref[...],
                preferred_element_type=jnp.float32)
    o_ref[...] = (o + b2_ref[...].astype(jnp.float32)).astype(o_ref.dtype)


def prepare_params(emb_table, w1, b1, w2, b2, *, n_split=None):
    """One-time weight prep (call once; NOT per forward step).

    * Casts weights / biases to bf16 (kernel is HBM-bound on weight bytes).
    * Pre-slices W2 / b2 into `n_split` contiguous column slabs of shape
      (n_split, n_out, n_half) so each grid step's dominant DMA is one long
      contiguous HBM stream.
    * n_split defaults to the number of TensorCores the 'parallel' grid axis
      can shard over (1 on v5e/v6e, 2 on v4/v5p/v7x).
    """
    n_emb, n_out = w1.shape
    if n_split is None:
        n_split = _tensorcores_per_device()
    if n_split > 1 and n_out % (128 * n_split) != 0:
        n_split = 1                                   # keep output slabs lane-dense
    n_half = n_out // n_split

    w1_b = w1.astype(jnp.bfloat16)
    b1_b = b1.astype(jnp.bfloat16).reshape(1, n_out)
    # (n_out, n_out) -> (n_split, n_out, n_half); slab j = W2[:, j*n_half:(j+1)*n_half]
    w2_b = w2.astype(jnp.bfloat16).reshape(n_out, n_split, n_half).transpose(1, 0, 2)
    b2_b = b2.astype(jnp.bfloat16).reshape(n_split, 1, n_half)
    return emb_table.astype(jnp.float32), w1_b, b1_b, w2_b, b2_b


def timestep_embedding_forward(t_idx, emb_table, w1, b1_2d, w2_slabs, b2_slabs):
    """Pallas TimestepEmbedding.forward on prepared params (see prepare_params).

    t_idx:     (B,) int32 timestep indices in [0, n_time)
    emb_table: (n_time, n_emb) f32
    w1:        (n_emb, n_out) bf16   (transposed vs. PyTorch's (out, in) layout)
    b1_2d:     (1, n_out) bf16
    w2_slabs:  (n_split, n_out, n_out // n_split) bf16
    b2_slabs:  (n_split, 1, n_out // n_split) bf16
    returns:   (B, n_out) f32
    """
    B = t_idx.shape[0]
    n_time, n_emb = emb_table.shape
    n_out = w1.shape[1]
    n_split, _, n_half = w2_slabs.shape

    t_idx = t_idx.astype(jnp.int32)

    grid_spec = pltpu.PrefetchScalarGridSpec(
        num_scalar_prefetch=1,                                          # t_idx -> SMEM
        grid=(n_split,),
        in_specs=[
            pl.BlockSpec(memory_space=pl.ANY),                          # emb table, raw HBM
            pl.BlockSpec((n_emb, n_out), lambda j, t: (0, 0)),          # W1 (resident)
            pl.BlockSpec((1, n_out), lambda j, t: (0, 0)),              # b1
            pl.BlockSpec((None, n_out, n_half), lambda j, t: (j, 0, 0)),  # W2 slab j (contiguous)
            pl.BlockSpec((None, 1, n_half), lambda j, t: (j, 0, 0)),      # b2 slab j
        ],
        out_specs=pl.BlockSpec((B, n_half), lambda j, t: (0, j)),
        scratch_shapes=[
            pltpu.VMEM((B, n_emb), jnp.float32),                        # gathered rows
            pltpu.SemaphoreType.DMA((B,)),                              # one sem per row DMA
        ],
    )

    return pl.pallas_call(
        _timestep_mlp_kernel,
        out_shape=jax.ShapeDtypeStruct((B, n_out), jnp.float32),
        grid_spec=grid_spec,
        compiler_params=pltpu.CompilerParams(
            dimension_semantics=("parallel",),
        ),
    )(t_idx, emb_table, w1, b1_2d, w2_slabs, b2_slabs)


def init_params(key, n_time=1024, n_emb=320, n_out=1280):
    """Deterministic parameter init matching the PyTorch module's shapes/init."""
    k_emb, k_w1, k_b1, k_w2, k_b2 = jax.random.split(key, 5)
    # nn.Embedding default: N(0, 1)
    emb_table = jax.random.normal(k_emb, (n_time, n_emb), dtype=jnp.float32)
    # nn.Linear default: U(-1/sqrt(fan_in), 1/sqrt(fan_in)) for weight and bias
    lim1 = 1.0 / math.sqrt(n_emb)
    w1 = jax.random.uniform(k_w1, (n_emb, n_out), jnp.float32, -lim1, lim1)
    b1 = jax.random.uniform(k_b1, (n_out,), jnp.float32, -lim1, lim1)
    lim2 = 1.0 / math.sqrt(n_out)
    w2 = jax.random.uniform(k_w2, (n_out, n_out), jnp.float32, -lim2, lim2)
    b2 = jax.random.uniform(k_b2, (n_out,), jnp.float32, -lim2, lim2)
    return emb_table, w1, b1, w2, b2


def reference_forward(t_idx, emb_table, w1, b1, w2, b2):
    x = emb_table[t_idx]
    h = x @ w1 + b1
    h = h * jax.nn.sigmoid(h)
    return h @ w2 + b2


if __name__ == "__main__":
    # Small shapes consistent with the module (defaults are 1024/320/1280);
    # kept (8, 128)-aligned.
    n_time, n_emb, n_out = 256, 128, 256
    B = 8

    key = jax.random.PRNGKey(0)
    k_params, k_idx = jax.random.split(key)
    emb_table, w1, b1, w2, b2 = init_params(k_params, n_time, n_emb, n_out)
    t_idx = jax.random.randint(k_idx, (B,), 0, n_time, dtype=jnp.int32)

    # Reference using the same bf16-quantized weights (f32 accumulation).
    q = lambda a: a.astype(jnp.bfloat16).astype(jnp.float32)
    ref = reference_forward(t_idx, emb_table, q(w1), q(b1), q(w2), q(b2))

    fwd = jax.jit(timestep_embedding_forward)

    # Generation-default split (1 on v5e/v6e, 2 on dual-TC chips).
    params = prepare_params(emb_table, w1, b1, w2, b2)
    out = jax.block_until_ready(fwd(t_idx, *params))
    assert out.shape == (B, n_out), out.shape
    assert bool(jnp.allclose(out, ref, rtol=1e-2, atol=1e-2)), "mismatch (default split)"

    # Also exercise the explicit 2-way slab path (sequential on 1-TC chips).
    params2 = prepare_params(emb_table, w1, b1, w2, b2, n_split=2)
    out2 = jax.block_until_ready(fwd(t_idx, *params2))
    assert bool(jnp.allclose(out2, ref, rtol=1e-2, atol=1e-2)), "mismatch (n_split=2)"

    print("KERNEL_OK")
</pallas_src>

<mosaic_0001>
module attributes {stable_mosaic.version = 11 : i64} {
  func.func @_timestep_mlp_kernel(%arg0: i32, %arg1: memref<8xi32, #tpu.memory_space<smem>>, %arg2: memref<256x128xf32, #tpu.memory_space<any>>, %arg3: memref<128x256xbf16, #tpu.memory_space<vmem>>, %arg4: memref<1x256xbf16, #tpu.memory_space<vmem>>, %arg5: memref<1x256x256xbf16, #tpu.memory_space<vmem>>, %arg6: memref<1x1x256xbf16, #tpu.memory_space<vmem>>, %arg7: memref<8x256xf32, #tpu.memory_space<vmem>>, %arg8: memref<8x128xf32, #tpu.memory_space<vmem>>, %arg9: memref<8x!tpu.dma_semaphore, #tpu.memory_space<semaphore_mem>>) attributes {dimension_semantics = [#tpu.dimension_semantics<parallel>], iteration_bounds = array<i64: 1>, scalar_prefetch = 1 : i64, scratch_operands = 2 : i64, tpu.core_type = #tpu.core_type<tc>, window_params = [{}, {pipeline_mode = #tpu.pipeline_mode<synchronous>, transform_indices = @transform_1, window_bounds = array<i64: 128, 256>}, {pipeline_mode = #tpu.pipeline_mode<synchronous>, transform_indices = @transform_2, window_bounds = array<i64: 1, 256>}, {transform_indices = @transform_3, window_bounds = array<i64: 1, 256, 256>}, {transform_indices = @transform_4, window_bounds = array<i64: 1, 1, 256>}, {transform_indices = @transform_5, window_bounds = array<i64: 8, 256>}]} {
    %c0 = arith.constant 0 : index
    %0 = memref.load %arg1[%c0] : memref<8xi32, #tpu.memory_space<smem>>
    %c0_i32 = arith.constant 0 : i32
    %c255_i32 = arith.constant 255 : i32
    %1 = arith.maxsi %c0_i32, %0 : i32
    %2 = arith.minsi %c255_i32, %1 : i32
    %c0_i32_0 = arith.constant 0 : i32
    %c0_i32_1 = arith.constant 0 : i32
    %c0_i32_2 = arith.constant 0 : i32
    %3 = tpu.memref_slice %arg2[%2, %c0_i32_2] : memref<256x128xf32, #tpu.memory_space<any>> -> memref<1x128xf32, #tpu.memory_space<any>>
    %4 = tpu.memref_squeeze %3 : memref<1x128xf32, #tpu.memory_space<any>> -> memref<128xf32, #tpu.memory_space<any>>
    %c0_i32_3 = arith.constant 0 : i32
    %5 = tpu.memref_slice %arg8[%c0_i32_0, %c0_i32_3] : memref<8x128xf32, #tpu.memory_space<vmem>> -> memref<1x128xf32, #tpu.memory_space<vmem>>
    %6 = tpu.memref_squeeze %5 : memref<1x128xf32, #tpu.memory_space<vmem>> -> memref<128xf32, #tpu.memory_space<vmem>>
    %7 = tpu.memref_slice %arg9[%c0_i32_1] : memref<8x!tpu.dma_semaphore, #tpu.memory_space<semaphore_mem>> -> memref<1x!tpu.dma_semaphore, #tpu.memory_space<semaphore_mem>>
    %8 = tpu.memref_squeeze %7 : memref<1x!tpu.dma_semaphore, #tpu.memory_space<semaphore_mem>> -> memref<!tpu.dma_semaphore, #tpu.memory_space<semaphore_mem>>
    tpu.enqueue_dma source(%4 : memref<128xf32, #tpu.memory_space<any>>) target(%6 : memref<128xf32, #tpu.memory_space<vmem>>) target_semaphore(%8 : memref<!tpu.dma_semaphore, #tpu.memory_space<semaphore_mem>>)
    %c1 = arith.constant 1 : index
    %9 = memref.load %arg1[%c1] : memref<8xi32, #tpu.memory_space<smem>>
    %c0_i32_4 = arith.constant 0 : i32
    %c255_i32_5 = arith.constant 255 : i32
    %10 = arith.maxsi %c0_i32_4, %9 : i32
    %11 = arith.minsi %c255_i32_5, %10 : i32
    %c1_i32 = arith.constant 1 : i32
    %c1_i32_6 = arith.constant 1 : i32
    %c0_i32_7 = arith.constant 0 : i32
    %12 = tpu.memref_slice %arg2[%11, %c0_i32_7] : memref<256x128xf32, #tpu.memory_space<any>> -> memref<1x128xf32, #tpu.memory_space<any>>
    %13 = tpu.memref_squeeze %12 : memref<1x128xf32, #tpu.memory_space<any>> -> memref<128xf32, #tpu.memory_space<any>>
    %c0_i32_8 = arith.constant 0 : i32
    %14 = tpu.memref_slice %arg8[%c1_i32, %c0_i32_8] : memref<8x128xf32, #tpu.memory_space<vmem>> -> memref<1x128xf32, #tpu.memory_space<vmem>>
    %15 = tpu.memref_squeeze %14 : memref<1x128xf32, #tpu.memory_space<vmem>> -> memref<128xf32, #tpu.memory_space<vmem>>
    %16 = tpu.memref_slice %arg9[%c1_i32_6] : memref<8x!tpu.dma_semaphore, #tpu.memory_space<semaphore_mem>> -> memref<1x!tpu.dma_semaphore, #tpu.memory_space<semaphore_mem>>
    %17 = tpu.memref_squeeze %16 : memref<1x!tpu.dma_semaphore, #tpu.memory_space<semaphore_mem>> -> memref<!tpu.dma_semaphore, #tpu.memory_space<semaphore_mem>>
    tpu.enqueue_dma source(%13 : memref<128xf32, #tpu.memory_space<any>>) target(%15 : memref<128xf32, #tpu.memory_space<vmem>>) target_semaphore(%17 : memref<!tpu.dma_semaphore, #tpu.memory_space<semaphore_mem>>)
    %c2 = arith.constant 2 : index
    %18 = memref.load %arg1[%c2] : memref<8xi32, #tpu.memory_space<smem>>
    %c0_i32_9 = arith.constant 0 : i32
    %c255_i32_10 = arith.constant 255 : i32
    %19 = arith.maxsi %c0_i32_9, %18 : i32
    %20 = arith.minsi %c255_i32_10, %19 : i32
    %c2_i32 = arith.constant 2 : i32
    %c2_i32_11 = arith.constant 2 : i32
    %c0_i32_12 = arith.constant 0 : i32
    %21 = tpu.memref_slice %arg2[%20, %c0_i32_12] : memref<256x128xf32, #tpu.memory_space<any>> -> memref<1x128xf32, #tpu.memory_space<any>>
    %22 = tpu.memref_squeeze %21 : memref<1x128xf32, #tpu.memory_space<any>> -> memref<128xf32, #tpu.memory_space<any>>
    %c0_i32_13 = arith.constant 0 : i32
    %23 = tpu.memref_slice %arg8[%c2_i32, %c0_i32_13] : memref<8x128xf32, #tpu.memory_space<vmem>> -> memref<1x128xf32, #tpu.memory_space<vmem>>
    %24 = tpu.memref_squeeze %23 : memref<1x128xf32, #tpu.memory_space<vmem>> -> memref<128xf32, #tpu.memory_space<vmem>>
    %25 = tpu.memref_slice %arg9[%c2_i32_11] : memref<8x!tpu.dma_semaphore, #tpu.memory_space<semaphore_mem>> -> memref<1x!tpu.dma_semaphore, #tpu.memory_space<semaphore_mem>>
    %26 = tpu.memref_squeeze %25 : memref<1x!tpu.dma_semaphore, #tpu.memory_space<semaphore_mem>> -> memref<!tpu.dma_semaphore, #tpu.memory_space<semaphore_mem>>
    tpu.enqueue_dma source(%22 : memref<128xf32, #tpu.memory_space<any>>) target(%24 : memref<128xf32, #tpu.memory_space<vmem>>) target_semaphore(%26 : memref<!tpu.dma_semaphore, #tpu.memory_space<semaphore_mem>>)
    %c3 = arith.constant 3 : index
    %27 = memref.load %arg1[%c3] : memref<8xi32, #tpu.memory_space<smem>>
    %c0_i32_14 = arith.constant 0 : i32
    %c255_i32_15 = arith.constant 255 : i32
    %28 = arith.maxsi %c0_i32_14, %27 : i32
    %29 = arith.minsi %c255_i32_15, %28 : i32
    %c3_i32 = arith.constant 3 : i32
    %c3_i32_16 = arith.constant 3 : i32
    %c0_i32_17 = arith.constant 0 : i32
    %30 = tpu.memref_slice %arg2[%29, %c0_i32_17] : memref<256x128xf32, #tpu.memory_space<any>> -> memref<1x128xf32, #tpu.memory_space<any>>
    %31 = tpu.memref_squeeze %30 : memref<1x128xf32, #tpu.memory_space<any>> -> memref<128xf32, #tpu.memory_space<any>>
    %c0_i32_18 = arith.constant 0 : i32
    %32 = tpu.memref_slice %arg8[%c3_i32, %c0_i32_18] : memref<8x128xf32, #tpu.memory_space<vmem>> -> memref<1x128xf32, #tpu.memory_space<vmem>>
    %33 = tpu.memref_squeeze %32 : memref<1x128xf32, #tpu.memory_space<vmem>> -> memref<128xf32, #tpu.memory_space<vmem>>
    %34 = tpu.memref_slice %arg9[%c3_i32_16] : memref<8x!tpu.dma_semaphore, #tpu.memory_space<semaphore_mem>> -> memref<1x!tpu.dma_semaphore, #tpu.memory_space<semaphore_mem>>
    %35 = tpu.memref_squeeze %34 : memref<1x!tpu.dma_semaphore, #tpu.memory_space<semaphore_mem>> -> memref<!tpu.dma_semaphore, #tpu.memory_space<semaphore_mem>>
    tpu.enqueue_dma source(%31 : memref<128xf32, #tpu.memory_space<any>>) target(%33 : memref<128xf32, #tpu.memory_space<vmem>>) target_semaphore(%35 : memref<!tpu.dma_semaphore, #tpu.memory_space<semaphore_mem>>)
    %c4 = arith.constant 4 : index
    %36 = memref.load %arg1[%c4] : memref<8xi32, #tpu.memory_space<smem>>
    %c0_i32_19 = arith.constant 0 : i32
    %c255_i32_20 = arith.constant 255 : i32
    %37 = arith.maxsi %c0_i32_19, %36 : i32
    %38 = arith.minsi %c255_i32_20, %37 : i32
    %c4_i32 = arith.constant 4 : i32
    %c4_i32_21 = arith.constant 4 : i32
    %c0_i32_22 = arith.constant 0 : i32
    %39 = tpu.memref_slice %arg2[%38, %c0_i32_22] : memref<256x128xf32, #tpu.memory_space<any>> -> memref<1x128xf32, #tpu.memory_space<any>>
    %40 = tpu.memref_squeeze %39 : memref<1x128xf32, #tpu.memory_space<any>> -> memref<128xf32, #tpu.memory_space<any>>
    %c0_i32_23 = arith.constant 0 : i32
    %41 = tpu.memref_slice %arg8[%c4_i32, %c0_i32_23] : memref<8x128xf32, #tpu.memory_space<vmem>> -> memref<1x128xf32, #tpu.memory_space<vmem>>
    %42 = tpu.memref_squeeze %41 : memref<1x128xf32, #tpu.memory_space<vmem>> -> memref<128xf32, #tpu.memory_space<vmem>>
    %43 = tpu.memref_slice %arg9[%c4_i32_21] : memref<8x!tpu.dma_semaphore, #tpu.memory_space<semaphore_mem>> -> memref<1x!tpu.dma_semaphore, #tpu.memory_space<semaphore_mem>>
    %44 = tpu.memref_squeeze %43 : memref<1x!tpu.dma_semaphore, #tpu.memory_space<semaphore_mem>> -> memref<!tpu.dma_semaphore, #tpu.memory_space<semaphore_mem>>
    tpu.enqueue_dma source(%40 : memref<128xf32, #tpu.memory_space<any>>) target(%42 : memref<128xf32, #tpu.memory_space<vmem>>) target_semaphore(%44 : memref<!tpu.dma_semaphore, #tpu.memory_space<semaphore_mem>>)
    %c5 = arith.constant 5 : index
    %45 = memref.load %arg1[%c5] : memref<8xi32, #tpu.memory_space<smem>>
    %c0_i32_24 = arith.constant 0 : i32
    %c255_i32_25 = arith.constant 255 : i32
    %46 = arith.maxsi %c0_i32_24, %45 : i32
    %47 = arith.minsi %c255_i32_25, %46 : i32
    %c5_i32 = arith.constant 5 : i32
    %c5_i32_26 = arith.constant 5 : i32
    %c0_i32_27 = arith.constant 0 : i32
    %48 = tpu.memref_slice %arg2[%47, %c0_i32_27] : memref<256x128xf32, #tpu.memory_space<any>> -> memref<1x128xf32, #tpu.memory_space<any>>
    %49 = tpu.memref_squeeze %48 : memref<1x128xf32, #tpu.memory_space<any>> -> memref<128xf32, #tpu.memory_space<any>>
    %c0_i32_28 = arith.constant 0 : i32
    %50 = tpu.memref_slice %arg8[%c5_i32, %c0_i32_28] : memref<8x128xf32, #tpu.memory_space<vmem>> -> memref<1x128xf32, #tpu.memory_space<vmem>>
    %51 = tpu.memref_squeeze %50 : memref<1x128xf32, #tpu.memory_space<vmem>> -> memref<128xf32, #tpu.memory_space<vmem>>
    %52 = tpu.memref_slice %arg9[%c5_i32_26] : memref<8x!tpu.dma_semaphore, #tpu.memory_space<semaphore_mem>> -> memref<1x!tpu.dma_semaphore, #tpu.memory_space<semaphore_mem>>
    %53 = tpu.memref_squeeze %52 : memref<1x!tpu.dma_semaphore, #tpu.memory_space<semaphore_mem>> -> memref<!tpu.dma_semaphore, #tpu.memory_space<semaphore_mem>>
    tpu.enqueue_dma source(%49 : memref<128xf32, #tpu.memory_space<any>>) target(%51 : memref<128xf32, #tpu.memory_space<vmem>>) target_semaphore(%53 : memref<!tpu.dma_semaphore, #tpu.memory_space<semaphore_mem>>)
    %c6 = arith.constant 6 : index
    %54 = memref.load %arg1[%c6] : memref<8xi32, #tpu.memory_space<smem>>
    %c0_i32_29 = arith.constant 0 : i32
    %c255_i32_30 = arith.constant 255 : i32
    %55 = arith.maxsi %c0_i32_29, %54 : i32
    %56 = arith.minsi %c255_i32_30, %55 : i32
    %c6_i32 = arith.constant 6 : i32
    %c6_i32_31 = arith.constant 6 : i32
    %c0_i32_32 = arith.constant 0 : i32
    %57 = tpu.memref_slice %arg2[%56, %c0_i32_32] : memref<256x128xf32, #tpu.memory_space<any>> -> memref<1x128xf32, #tpu.memory_space<any>>
    %58 = tpu.memref_squeeze %57 : memref<1x128xf32, #tpu.memory_space<any>> -> memref<128xf32, #tpu.memory_space<any>>
    %c0_i32_33 = arith.constant 0 : i32
    %59 = tpu.memref_slice %arg8[%c6_i32, %c0_i32_33] : memref<8x128xf32, #tpu.memory_space<vmem>> -> memref<1x128xf32, #tpu.memory_space<vmem>>
    %60 = tpu.memref_squeeze %59 : memref<1x128xf32, #tpu.memory_space<vmem>> -> memref<128xf32, #tpu.memory_space<vmem>>
    %61 = tpu.memref_slice %arg9[%c6_i32_31] : memref<8x!tpu.dma_semaphore, #tpu.memory_space<semaphore_mem>> -> memref<1x!tpu.dma_semaphore, #tpu.memory_space<semaphore_mem>>
    %62 = tpu.memref_squeeze %61 : memref<1x!tpu.dma_semaphore, #tpu.memory_space<semaphore_mem>> -> memref<!tpu.dma_semaphore, #tpu.memory_space<semaphore_mem>>
    tpu.enqueue_dma source(%58 : memref<128xf32, #tpu.memory_space<any>>) target(%60 : memref<128xf32, #tpu.memory_space<vmem>>) target_semaphore(%62 : memref<!tpu.dma_semaphore, #tpu.memory_space<semaphore_mem>>)
    %c7 = arith.constant 7 : index
    %63 = memref.load %arg1[%c7] : memref<8xi32, #tpu.memory_space<smem>>
    %c0_i32_34 = arith.constant 0 : i32
    %c255_i32_35 = arith.constant 255 : i32
    %64 = arith.maxsi %c0_i32_34, %63 : i32
    %65 = arith.minsi %c255_i32_35, %64 : i32
    %c7_i32 = arith.constant 7 : i32
    %c7_i32_36 = arith.constant 7 : i32
    %c0_i32_37 = arith.constant 0 : i32
    %66 = tpu.memref_slice %arg2[%65, %c0_i32_37] : memref<256x128xf32, #tpu.memory_space<any>> -> memref<1x128xf32, #tpu.memory_space<any>>
    %67 = tpu.memref_squeeze %66 : memref<1x128xf32, #tpu.memory_space<any>> -> memref<128xf32, #tpu.memory_space<any>>
    %c0_i32_38 = arith.constant 0 : i32
    %68 = tpu.memref_slice %arg8[%c7_i32, %c0_i32_38] : memref<8x128xf32, #tpu.memory_space<vmem>> -> memref<1x128xf32, #tpu.memory_space<vmem>>
    %69 = tpu.memref_squeeze %68 : memref<1x128xf32, #tpu.memory_space<vmem>> -> memref<128xf32, #tpu.memory_space<vmem>>
    %70 = tpu.memref_slice %arg9[%c7_i32_36] : memref<8x!tpu.dma_semaphore, #tpu.memory_space<semaphore_mem>> -> memref<1x!tpu.dma_semaphore, #tpu.memory_space<semaphore_mem>>
    %71 = tpu.memref_squeeze %70 : memref<1x!tpu.dma_semaphore, #tpu.memory_space<semaphore_mem>> -> memref<!tpu.dma_semaphore, #tpu.memory_space<semaphore_mem>>
    tpu.enqueue_dma source(%67 : memref<128xf32, #tpu.memory_space<any>>) target(%69 : memref<128xf32, #tpu.memory_space<vmem>>) target_semaphore(%71 : memref<!tpu.dma_semaphore, #tpu.memory_space<semaphore_mem>>)
    %c0_i32_39 = arith.constant 0 : i32
    %c0_i32_40 = arith.constant 0 : i32
    %c0_i32_41 = arith.constant 0 : i32
    %72 = tpu.memref_slice %arg2[%2, %c0_i32_41] : memref<256x128xf32, #tpu.memory_space<any>> -> memref<1x128xf32, #tpu.memory_space<any>>
    %73 = tpu.memref_squeeze %72 : memref<1x128xf32, #tpu.memory_space<any>> -> memref<128xf32, #tpu.memory_space<any>>
    %c0_i32_42 = arith.constant 0 : i32
    %74 = tpu.memref_slice %arg8[%c0_i32_39, %c0_i32_42] : memref<8x128xf32, #tpu.memory_space<vmem>> -> memref<1x128xf32, #tpu.memory_space<vmem>>
    %75 = tpu.memref_squeeze %74 : memref<1x128xf32, #tpu.memory_space<vmem>> -> memref<128xf32, #tpu.memory_space<vmem>>
    %76 = tpu.memref_slice %arg9[%c0_i32_40] : memref<8x!tpu.dma_semaphore, #tpu.memory_space<semaphore_mem>> -> memref<1x!tpu.dma_semaphore, #tpu.memory_space<semaphore_mem>>
    %77 = tpu.memref_squeeze %76 : memref<1x!tpu.dma_semaphore, #tpu.memory_space<semaphore_mem>> -> memref<!tpu.dma_semaphore, #tpu.memory_space<semaphore_mem>>
    tpu.wait_dma2 semaphore(%77 : memref<!tpu.dma_semaphore, #tpu.memory_space<semaphore_mem>>) src(%73 : memref<128xf32, #tpu.memory_space<any>>) dst(%75 : memref<128xf32, #tpu.memory_space<vmem>>)
    %c1_i32_43 = arith.constant 1 : i32
    %c1_i32_44 = arith.constant 1 : i32
    %c0_i32_45 = arith.constant 0 : i32
    %78 = tpu.memref_slice %arg2[%11, %c0_i32_45] : memref<256x128xf32, #tpu.memory_space<any>> -> memref<1x128xf32, #tpu.memory_space<any>>
    %79 = tpu.memref_squeeze %78 : memref<1x128xf32, #tpu.memory_space<any>> -> memref<128xf32, #tpu.memory_space<any>>
    %c0_i32_46 = arith.constant 0 : i32
    %80 = tpu.memref_slice %arg8[%c1_i32_43, %c0_i32_46] : memref<8x128xf32, #tpu.memory_space<vmem>> -> memref<1x128xf32, #tpu.memory_space<vmem>>
    %81 = tpu.memref_squeeze %80 : memref<1x128xf32, #tpu.memory_space<vmem>> -> memref<128xf32, #tpu.memory_space<vmem>>
    %82 = tpu.memref_slice %arg9[%c1_i32_44] : memref<8x!tpu.dma_semaphore, #tpu.memory_space<semaphore_mem>> -> memref<1x!tpu.dma_semaphore, #tpu.memory_space<semaphore_mem>>
    %83 = tpu.memref_squeeze %82 : memref<1x!tpu.dma_semaphore, #tpu.memory_space<semaphore_mem>> -> memref<!tpu.dma_semaphore, #tpu.memory_space<semaphore_mem>>
    tpu.wait_dma2 semaphore(%83 : memref<!tpu.dma_semaphore, #tpu.memory_space<semaphore_mem>>) src(%79 : memref<128xf32, #tpu.memory_space<any>>) dst(%81 : memref<128xf32, #tpu.memory_space<vmem>>)
    %c2_i32_47 = arith.constant 2 : i32
    %c2_i32_48 = arith.constant 2 : i32
    %c0_i32_49 = arith.constant 0 : i32
    %84 = tpu.memref_slice %arg2[%20, %c0_i32_49] : memref<256x128xf32, #tpu.memory_space<any>> -> memref<1x128xf32, #tpu.memory_space<any>>
    %85 = tpu.memref_squeeze %84 : memref<1x128xf32, #tpu.memory_space<any>> -> memref<128xf32, #tpu.memory_space<any>>
    %c0_i32_50 = arith.constant 0 : i32
    %86 = tpu.memref_slice %arg8[%c2_i32_47, %c0_i32_50] : memref<8x128xf32, #tpu.memory_space<vmem>> -> memref<1x128xf32, #tpu.memory_space<vmem>>
    %87 = tpu.memref_squeeze %86 : memref<1x128xf32, #tpu.memory_space<vmem>> -> memref<128xf32, #tpu.memory_space<vmem>>
    %88 = tpu.memref_slice %arg9[%c2_i32_48] : memref<8x!tpu.dma_semaphore, #tpu.memory_space<semaphore_mem>> -> memref<1x!tpu.dma_semaphore, #tpu.memory_space<semaphore_mem>>
    %89 = tpu.memref_squeeze %88 : memref<1x!tpu.dma_semaphore, #tpu.memory_space<semaphore_mem>> -> memref<!tpu.dma_semaphore, #tpu.memory_space<semaphore_mem>>
    tpu.wait_dma2 semaphore(%89 : memref<!tpu.dma_semaphore, #tpu.memory_space<semaphore_mem>>) src(%85 : memref<128xf32, #tpu.memory_space<any>>) dst(%87 : memref<128xf32, #tpu.memory_space<vmem>>)
    %c3_i32_51 = arith.constant 3 : i32
    %c3_i32_52 = arith.constant 3 : i32
    %c0_i32_53 = arith.constant 0 : i32
    %90 = tpu.memref_slice %arg2[%29, %c0_i32_53] : memref<256x128xf32, #tpu.memory_space<any>> -> memref<1x128xf32, #tpu.memory_space<any>>
    %91 = tpu.memref_squeeze %90 : memref<1x128xf32, #tpu.memory_space<any>> -> memref<128xf32, #tpu.memory_space<any>>
    %c0_i32_54 = arith.constant 0 : i32
    %92 = tpu.memref_slice %arg8[%c3_i32_51, %c0_i32_54] : memref<8x128xf32, #tpu.memory_space<vmem>> -> memref<1x128xf32, #tpu.memory_space<vmem>>
    %93 = tpu.memref_squeeze %92 : memref<1x128xf32, #tpu.memory_space<vmem>> -> memref<128xf32, #tpu.memory_space<vmem>>
    %94 = tpu.memref_slice %arg9[%c3_i32_52] : memref<8x!tpu.dma_semaphore, #tpu.memory_space<semaphore_mem>> -> memref<1x!tpu.dma_semaphore, #tpu.memory_space<semaphore_mem>>
    %95 = tpu.memref_squeeze %94 : memref<1x!tpu.dma_semaphore, #tpu.memory_space<semaphore_mem>> -> memref<!tpu.dma_semaphore, #tpu.memory_space<semaphore_mem>>
    tpu.wait_dma2 semaphore(%95 : memref<!tpu.dma_semaphore, #tpu.memory_space<semaphore_mem>>) src(%91 : memref<128xf32, #tpu.memory_space<any>>) dst(%93 : memref<128xf32, #tpu.memory_space<vmem>>)
    %c4_i32_55 = arith.constant 4 : i32
    %c4_i32_56 = arith.constant 4 : i32
    %c0_i32_57 = arith.constant 0 : i32
    %96 = tpu.memref_slice %arg2[%38, %c0_i32_57] : memref<256x128xf32, #tpu.memory_space<any>> -> memref<1x128xf32, #tpu.memory_space<any>>
    %97 = tpu.memref_squeeze %96 : memref<1x128xf32, #tpu.memory_space<any>> -> memref<128xf32, #tpu.memory_space<any>>
    %c0_i32_58 = arith.constant 0 : i32
    %98 = tpu.memref_slice %arg8[%c4_i32_55, %c0_i32_58] : memref<8x128xf32, #tpu.memory_space<vmem>> -> memref<1x128xf32, #tpu.memory_space<vmem>>
    %99 = tpu.memref_squeeze %98 : memref<1x128xf32, #tpu.memory_space<vmem>> -> memref<128xf32, #tpu.memory_space<vmem>>
    %100 = tpu.memref_slice %arg9[%c4_i32_56] : memref<8x!tpu.dma_semaphore, #tpu.memory_space<semaphore_mem>> -> memref<1x!tpu.dma_semaphore, #tpu.memory_space<semaphore_mem>>
    %101 = tpu.memref_squeeze %100 : memref<1x!tpu.dma_semaphore, #tpu.memory_space<semaphore_mem>> -> memref<!tpu.dma_semaphore, #tpu.memory_space<semaphore_mem>>
    tpu.wait_dma2 semaphore(%101 : memref<!tpu.dma_semaphore, #tpu.memory_space<semaphore_mem>>) src(%97 : memref<128xf32, #tpu.memory_space<any>>) dst(%99 : memref<128xf32, #tpu.memory_space<vmem>>)
    %c5_i32_59 = arith.constant 5 : i32
    %c5_i32_60 = arith.constant 5 : i32
    %c0_i32_61 = arith.constant 0 : i32
    %102 = tpu.memref_slice %arg2[%47, %c0_i32_61] : memref<256x128xf32, #tpu.memory_space<any>> -> memref<1x128xf32, #tpu.memory_space<any>>
    %103 = tpu.memref_squeeze %102 : memref<1x128xf32, #tpu.memory_space<any>> -> memref<128xf32, #tpu.memory_space<any>>
    %c0_i32_62 = arith.constant 0 : i32
    %104 = tpu.memref_slice %arg8[%c5_i32_59, %c0_i32_62] : memref<8x128xf32, #tpu.memory_space<vmem>> -> memref<1x128xf32, #tpu.memory_space<vmem>>
    %105 = tpu.memref_squeeze %104 : memref<1x128xf32, #tpu.memory_space<vmem>> -> memref<128xf32, #tpu.memory_space<vmem>>
    %106 = tpu.memref_slice %arg9[%c5_i32_60] : memref<8x!tpu.dma_semaphore, #tpu.memory_space<semaphore_mem>> -> memref<1x!tpu.dma_semaphore, #tpu.memory_space<semaphore_mem>>
    %107 = tpu.memref_squeeze %106 : memref<1x!tpu.dma_semaphore, #tpu.memory_space<semaphore_mem>> -> memref<!tpu.dma_semaphore, #tpu.memory_space<semaphore_mem>>
    tpu.wait_dma2 semaphore(%107 : memref<!tpu.dma_semaphore, #tpu.memory_space<semaphore_mem>>) src(%103 : memref<128xf32, #tpu.memory_space<any>>) dst(%105 : memref<128xf32, #tpu.memory_space<vmem>>)
    %c6_i32_63 = arith.constant 6 : i32
    %c6_i32_64 = arith.constant 6 : i32
    %c0_i32_65 = arith.constant 0 : i32
    %108 = tpu.memref_slice %arg2[%56, %c0_i32_65] : memref<256x128xf32, #tpu.memory_space<any>> -> memref<1x128xf32, #tpu.memory_space<any>>
    %109 = tpu.memref_squeeze %108 : memref<1x128xf32, #tpu.memory_space<any>> -> memref<128xf32, #tpu.memory_space<any>>
    %c0_i32_66 = arith.constant 0 : i32
    %110 = tpu.memref_slice %arg8[%c6_i32_63, %c0_i32_66] : memref<8x128xf32, #tpu.memory_space<vmem>> -> memref<1x128xf32, #tpu.memory_space<vmem>>
    %111 = tpu.memref_squeeze %110 : memref<1x128xf32, #tpu.memory_space<vmem>> -> memref<128xf32, #tpu.memory_space<vmem>>
    %112 = tpu.memref_slice %arg9[%c6_i32_64] : memref<8x!tpu.dma_semaphore, #tpu.memory_space<semaphore_mem>> -> memref<1x!tpu.dma_semaphore, #tpu.memory_space<semaphore_mem>>
    %113 = tpu.memref_squeeze %112 : memref<1x!tpu.dma_semaphore, #tpu.memory_space<semaphore_mem>> -> memref<!tpu.dma_semaphore, #tpu.memory_space<semaphore_mem>>
    tpu.wait_dma2 semaphore(%113 : memref<!tpu.dma_semaphore, #tpu.memory_space<semaphore_mem>>) src(%109 : memref<128xf32, #tpu.memory_space<any>>) dst(%111 : memref<128xf32, #tpu.memory_space<vmem>>)
    %c7_i32_67 = arith.constant 7 : i32
    %c7_i32_68 = arith.constant 7 : i32
    %c0_i32_69 = arith.constant 0 : i32
    %114 = tpu.memref_slice %arg2[%65, %c0_i32_69] : memref<256x128xf32, #tpu.memory_space<any>> -> memref<1x128xf32, #tpu.memory_space<any>>
    %115 = tpu.memref_squeeze %114 : memref<1x128xf32, #tpu.memory_space<any>> -> memref<128xf32, #tpu.memory_space<any>>
    %c0_i32_70 = arith.constant 0 : i32
    %116 = tpu.memref_slice %arg8[%c7_i32_67, %c0_i32_70] : memref<8x128xf32, #tpu.memory_space<vmem>> -> memref<1x128xf32, #tpu.memory_space<vmem>>
    %117 = tpu.memref_squeeze %116 : memref<1x128xf32, #tpu.memory_space<vmem>> -> memref<128xf32, #tpu.memory_space<vmem>>
    %118 = tpu.memref_slice %arg9[%c7_i32_68] : memref<8x!tpu.dma_semaphore, #tpu.memory_space<semaphore_mem>> -> memref<1x!tpu.dma_semaphore, #tpu.memory_space<semaphore_mem>>
    %119 = tpu.memref_squeeze %118 : memref<1x!tpu.dma_semaphore, #tpu.memory_space<semaphore_mem>> -> memref<!tpu.dma_semaphore, #tpu.memory_space<semaphore_mem>>
    tpu.wait_dma2 semaphore(%119 : memref<!tpu.dma_semaphore, #tpu.memory_space<semaphore_mem>>) src(%115 : memref<128xf32, #tpu.memory_space<any>>) dst(%117 : memref<128xf32, #tpu.memory_space<vmem>>)
    %c0_71 = arith.constant 0 : index
    %c0_72 = arith.constant 0 : index
    %120 = vector.load %arg8[%c0_71, %c0_72] : memref<8x128xf32, #tpu.memory_space<vmem>>, vector<8x128xf32>
    %121 = arith.truncf %120 : vector<8x128xf32> to vector<8x128xbf16>
    %c0_73 = arith.constant 0 : index
    %c0_74 = arith.constant 0 : index
    %122 = vector.load %arg3[%c0_73, %c0_74] : memref<128x256xbf16, #tpu.memory_space<vmem>>, vector<128x256xbf16>
    %cst = arith.constant dense<0.000000e+00> : vector<8x256xf32>
    %123 = tpu.matmul %121, %122, %cst {dimension_numbers = #tpu.dot_dimension_numbers<[1], [0], [0], [1], [0, 0, 1, 1], [], []>} : vector<8x128xbf16>, vector<128x256xbf16>, vector<8x256xf32> -> vector<8x256xf32>
    %c0_75 = arith.constant 0 : index
    %c0_76 = arith.constant 0 : index
    %124 = vector.load %arg4[%c0_75, %c0_76] : memref<1x256xbf16, #tpu.memory_space<vmem>>, vector<1x256xbf16>
    %125 = arith.extf %124 : vector<1x256xbf16> to vector<1x256xf32>
    %126 = vector.broadcast %125 : vector<1x256xf32> to vector<8x256xf32>
    %127 = arith.addf %123, %126 : vector<8x256xf32>
    %128 = arith.negf %127 : vector<8x256xf32>
    %129 = math.exp %128 : vector<8x256xf32>
    %cst_77 = arith.constant 1.000000e+00 : f32
    %130 = vector.broadcast %cst_77 : f32 to vector<8x256xf32>
    %131 = arith.addf %130, %129 : vector<8x256xf32>
    %132 = arith.divf %130, %131 : vector<8x256xf32>
    %133 = arith.mulf %127, %132 : vector<8x256xf32>
    %134 = arith.truncf %133 : vector<8x256xf32> to vector<8x256xbf16>
    %c0_78 = arith.constant 0 : index
    %c0_79 = arith.constant 0 : index
    %c0_80 = arith.constant 0 : index
    %135 = vector.load %arg5[%c0_78, %c0_79, %c0_80] : memref<1x256x256xbf16, #tpu.memory_space<vmem>>, vector<1x256x256xbf16>
    %136 = vector.shape_cast %135 : vector<1x256x256xbf16> to vector<256x256xbf16>
    %cst_81 = arith.constant dense<0.000000e+00> : vector<8x256xf32>
    %137 = tpu.matmul %134, %136, %cst_81 {dimension_numbers = #tpu.dot_dimension_numbers<[1], [0], [0], [1], [0, 0, 1, 1], [], []>} : vector<8x256xbf16>, vector<256x256xbf16>, vector<8x256xf32> -> vector<8x256xf32>
    %c0_82 = arith.constant 0 : index
    %c0_83 = arith.constant 0 : index
    %c0_84 = arith.constant 0 : index
    %138 = vector.load %arg6[%c0_82, %c0_83, %c0_84] : memref<1x1x256xbf16, #tpu.memory_space<vmem>>, vector<1x1x256xbf16>
    %139 = vector.shape_cast %138 : vector<1x1x256xbf16> to vector<1x256xbf16>
    %140 = arith.extf %139 : vector<1x256xbf16> to vector<1x256xf32>
    %141 = vector.broadcast %140 : vector<1x256xf32> to vector<8x256xf32>
    %142 = arith.addf %137, %141 : vector<8x256xf32>
    %c0_85 = arith.constant 0 : index
    %c0_86 = arith.constant 0 : index
    %143 = vector.load %arg7[%c0_85, %c0_86] : memref<8x256xf32, #tpu.memory_space<vmem>>, vector<8x256xf32>
    tpu.vector_store %arg7[%c0_85, %c0_86], %142 {strides = array<i32>} : memref<8x256xf32, #tpu.memory_space<vmem>>, vector<8x256xf32>,
    return
  }
  func.func @transform_1(%arg0: i32, %arg1: memref<8xi32, #tpu.memory_space<smem>>) -> (i32, i32) {
    %c0_i32 = arith.constant 0 : i32
    %c0_i32_0 = arith.constant 0 : i32
    %c0_i32_1 = arith.constant 0 : i32
    return %c0_i32, %c0_i32_0 : i32, i32
  }
  func.func @transform_2(%arg0: i32, %arg1: memref<8xi32, #tpu.memory_space<smem>>) -> (i32, i32) {
    %c0_i32 = arith.constant 0 : i32
    %c0_i32_0 = arith.constant 0 : i32
    %c0_i32_1 = arith.constant 0 : i32
    return %c0_i32, %c0_i32_0 : i32, i32
  }
  func.func @transform_3(%arg0: i32, %arg1: memref<8xi32, #tpu.memory_space<smem>>) -> (i32, i32, i32) {
    %c0_i32 = arith.constant 0 : i32
    %c0_i32_0 = arith.constant 0 : i32
    %c0_i32_1 = arith.constant 0 : i32
    return %arg0, %c0_i32, %c0_i32_0 : i32, i32, i32
  }
  func.func @transform_4(%arg0: i32, %arg1: memref<8xi32, #tpu.memory_space<smem>>) -> (i32, i32, i32) {
    %c0_i32 = arith.constant 0 : i32
    %c0_i32_0 = arith.constant 0 : i32
    %c0_i32_1 = arith.constant 0 : i32
    return %arg0, %c0_i32, %c0_i32_0 : i32, i32, i32
  }
  func.func @transform_5(%arg0: i32, %arg1: memref<8xi32, #tpu.memory_space<smem>>) -> (i32, i32) {
    %c0_i32 = arith.constant 0 : i32
    %c0_i32_0 = arith.constant 0 : i32
    return %c0_i32, %arg0 : i32, i32
  }
}

</mosaic_0001>

<bundles_post_ra>
// kernel: timestep_embedding_forward.1
= control target key start
LH: loop header
LB: loop body
LE: loop exit
PB: predicated region body
PF: predicated region fallthrough
CT: control target
= control target key end

     0   :  { %s1537_s0 = inlined_call_operand.hbm [shape: s32[8], index: 0, kind: input, shape index: {}]   ;;  %s1538_s1 = inlined_call_operand.hbm [shape: f32[256,128], index: 1, kind: input, shape index: {}]   ;;  %s1539_s2 = inlined_call_operand.hbm [shape: bf16[128,256], index: 2, kind: input, shape index: {}]   ;;  %s1540_s3 = inlined_call_operand.vmem [shape: bf16[1,256], index: 3, kind: input, shape index: {}]   ;;  %s1541_s4 = inlined_call_operand.hbm [shape: bf16[1,256,256], index: 4, kind: input, shape index: {}]   ;;  %s1542_s5 = inlined_call_operand.vmem [shape: bf16[1,1,256], index: 5, kind: input, shape index: {}]   ;;  %s1543_s6 = inlined_call_operand.hbm [shape: f32[8,256], index: 6, kind: output, shape index: {}]  }
   0x1   :  { %s970_s23 = scalar_lea.hbm %s1537_s0, 16 }
   0x2   :  { %p971_p0 = scmp.ne.s32.totalorder %s1537_s0, %s970_s23  ;;  %p974_p1 = scmp.lt.u32.totalorder %s970_s23, %s1537_s0 }
   0x4   :  { %p976_p2 = pnand %p974_p1, %p971_p0 }
   0x6   :  { %979 = shalt.err (!%p976_p2)  }
   0x7   :  { %s1262_s28 = smov [#allocation5]  }
   0x8   :  { %12 = dma.hbm_to_smem %s1537_s0, 16, %s1262_s28, [#allocation4] }
   0x9   :  { %1238 = dma.done.wait [#allocation4], 16 }
   0xa   :  { %1239 = vsyncadd [#allocation4], 4294967280 }
   0xb   :  { %14 = sfence }
   0xc   :  { %15 = vsyncpa [#allocation7], 0 }
   0xd   :  { %16 = vsyncpa [#allocation10], 0 }
   0xe   :  { %17 = vsyncpa [#allocation8], 0  ;;  %s1263_s7 = smov [#allocation6]   ;;  %s980_s11 = scalar_lea.hbm %s1539_s2, 2048 }
   0xf   :  { %s23_s8 = sshll.u32 %s1263_s7, 4  ;;  %p981_p3 = scmp.ne.s32.totalorder %s1539_s2, %s980_s11  ;;  %s24_s8 = int_to_ptr.vmem [resolvable:$true] %s23_s8 }
  0x10   :  { %p984_p4 = scmp.lt.u32.totalorder %s980_s11, %s1539_s2 }
  0x12   :  { %p986_p5 = pnand %p984_p4, %p981_p3 }
  0x14   :  { %989 = shalt.err (!%p986_p5)
}
  0x15   :  { %s990_s0 = scalar_lea.vmem %s24_s8, 2048  ;;  %p995_p7 = scmp.lt.s32.totalorder %s24_s8, %s24_s8 }
  0x16   :  { %p991_p6 = scmp.ne.s32.totalorder %s24_s8, %s990_s0  ;;  %p996_p8 = scmp.lt.s32.totalorder %s990_s0, %s990_s0 }
  0x18   :  { %p997_p9 = por %p996_p8, %p995_p7 }
  0x1a   :  { %p998_p10 = pnand %p997_p9, %p991_p6 }
  0x1c   :  { %1001 = shalt.err (!%p998_p10)
}
  0x1d   :  { %s1264_s16 = smov 128   ;;  %s1265_s17 = smov 8  }
  0x1e   :  { %29 = dma.hbm_to_vmem [thread:$0]  %s1539_s2, 2048, %s24_s8, [#allocation7], %s1264_s16, %s1264_s16, %s1265_s17  }
  0x1f   :  { %s1266_s20 = smov [#allocation9]   ;;  %s1002_s24 = scalar_lea.hbm %s1541_s4, 4096 }
  0x20   :  { %s37_s21 = sshll.u32 %s1266_s20, 4  ;;  %p1003_p11 = scmp.ne.s32.totalorder %s1541_s4, %s1002_s24  ;;  %s38_s21 = int_to_ptr.vmem [resolvable:$true] %s37_s21 }
  0x21   :  { %p1006_p12 = scmp.lt.u32.totalorder %s1002_s24, %s1541_s4 }
  0x23   :  { %p1008_p13 = pnand %p1006_p12, %p1003_p11 }
  0x25   :  { %1011 = shalt.err (!%p1008_p13)
}
  0x26   :  { %s1012_s29 = scalar_lea.vmem %s38_s21, 4096  ;;  %p1017_p1 = scmp.lt.s32.totalorder %s38_s21, %s38_s21 }
  0x27   :  { %p1013_p0 = scmp.ne.s32.totalorder %s38_s21, %s1012_s29  ;;  %p1018_p2 = scmp.lt.s32.totalorder %s1012_s29, %s1012_s29 }
  0x29   :  { %p1019_p3 = por %p1018_p2, %p1017_p1 }
  0x2b   :  { %p1020_p4 = pnand %p1019_p3, %p1013_p0 }
  0x2d   :  { %1023 = shalt.err (!%p1020_p4)
}
  0x2e   :  { %43 = dma.hbm_to_vmem [thread:$0]  %s1541_s4, 4096, %s38_s21, [#allocation10], %s1264_s16, %s1264_s16, %s1265_s17  }
  0x2f   :  { %1240 = dma.done.wait [#allocation7], 2048  }
  0x30   :  { %1241 = vsyncadd [#allocation7], 4294965248 }
  0x31   :  { %1242 = dma.done.wait [#allocation10], 4096  }
  0x32   :  { %1243 = vsyncadd [#allocation10], 4294963200  ;;  %s53_s7 = sld [smem:[#allocation5]]  ;;  %s1267_s8 = smov [#allocation2]  }
  0x33   :  { %s67_s9 = sshll.u32 %s1267_s8, 4  ;;  %s752_s10 = sld [smem:[#allocation5 + $0x1]]  ;;  %s1348_s9 = int_to_ptr.vmem [resolvable:$true] %s67_s9 }
  0x34   :  { %s1268_s11 = smov [#allocation2 + $0x1]   ;;  %s1350_s13 = sld [smem:[#allocation5 + $0x2]] }
  0x35   :  { %s87_s12 = sshll.u32 %s1268_s11, 4  ;;  %s1269_s14 = smov [#allocation2 + $0x2]   ;;  %s1352_s12 = int_to_ptr.vmem [resolvable:$true] %s87_s12 }
  0x36   :  { %s107_s15 = sshll.u32 %s1269_s14, 4  ;;  %s1354_s4 = sld [smem:[#allocation5 + $0x3]]  ;;  %s1356_s15 = int_to_ptr.vmem [resolvable:$true] %s107_s15 }
  0x37   :  { %s1365_s23 = scalar_lea.hbm %s1538_s1, 4096 }
  0x38   :  { %p54_p5 = scmp.gt.s32.totalorder %s53_s7, 0  ;;  %p746_p6 = scmp.lt.s32.totalorder %s53_s7, 255 }
  0x39   :  { %p72_p7 = scmp.gt.s32.totalorder %s752_s10, 0  ;;  %p753_p8 = scmp.lt.s32.totalorder %s752_s10, 255 }
  0x3a   :  { %s1547_s7 = smov (!%p54_p5, %s53_s7), 0  ;;  %p92_p9 = scmp.gt.s32.totalorder %s1350_s13, 0 }
  0x3b   :  { %s1549_s10 = smov (!%p72_p7, %s752_s10), 0  ;;  %s1551_s7 = smov (!%p746_p6, %s1547_s7), 255 }
  0x3c   :  { %s1553_s10 = smov (!%p753_p8, %s1549_s10), 255  ;;  %s751_s0 = sshll.u32 %s1551_s7, 4 }
  0x3d   :  { %s59_s18 = scalar_lea.hbm %s1538_s1, %s751_s0  ;;  %s758_s19 = sshll.u32 %s1553_s10, 4 }
  0x3e   :  { %s1024_s20 = scalar_lea.hbm %s59_s18, 16  ;;  %p1027_p11 = scmp.lt.u32.totalorder %s59_s18, %s1538_s1 }
  0x3f   :  { %p1025_p10 = scmp.ne.s32.totalorder %s59_s18, %s1024_s20  ;;  %p1028_p12 = scmp.lt.u32.totalorder %s1365_s23, %s1024_s20 }
  0x40   :  { %p1030_p0 = scmp.lt.u32.totalorder %s1024_s20, %s59_s18 }
  0x41   :  { %p1029_p13 = por %p1028_p12, %p1027_p11 }
  0x43   :  { %p1031_p1 = por %p1030_p0, %p1029_p13 }
  0x45   :  { %p1032_p2 = pnand %p1031_p1, %p1025_p10 }
  0x47   :  { %1035 = shalt.err (!%p1032_p2)  }
  0x48   :  { %s1036_s26 = scalar_lea.vmem %s1348_s9, 16  ;;  %s1374_s27 = scalar_lea.vmem %s1348_s9, 128 }
  0x49   :  { %p1037_p3 = scmp.ne.s32.totalorder %s1348_s9, %s1036_s26  ;;  %p1041_p4 = scmp.lt.s32.totalorder %s1348_s9, %s1348_s9 }
  0x4a   :  { %p1042_p5 = scmp.lt.s32.totalorder %s1374_s27, %s1036_s26 }
  0x4c   :  { %p1043_p6 = por %p1042_p5, %p1041_p4 }
  0x4e   :  { %p1044_p7 = pnand %p1043_p6, %p1037_p3 }
  0x50   :  { %1047 = shalt.err (!%p1044_p7)  }
  0x51   :  { %70 = dma.hbm_to_vmem [thread:$0]  %s59_s18, 16, %s1348_s9, [#allocation3] }
  0x52   :  { %s77_s2 = scalar_lea.hbm %s1538_s1, %s758_s19  ;;  %p760_p8 = scmp.lt.s32.totalorder %s1350_s13, 255 }
  0x53   :  { %s1048_s30 = scalar_lea.hbm %s77_s2, 16  ;;  %p1051_p11 = scmp.lt.u32.totalorder %s77_s2, %s1538_s1 }
  0x54   :  { %p1049_p10 = scmp.ne.s32.totalorder %s77_s2, %s1048_s30  ;;  %p1052_p12 = scmp.lt.u32.totalorder %s1365_s23, %s1048_s30 }
  0x55   :  { %p1054_p0 = scmp.lt.u32.totalorder %s1048_s30, %s77_s2 }
  0x56   :  { %p1053_p13 = por %p1052_p12, %p1051_p11 }
  0x58   :  { %p1055_p1 = por %p1054_p0, %p1053_p13 }
  0x5a   :  { %p1056_p2 = pnand %p1055_p1, %p1049_p10 }
  0x5c   :  { %1059 = shalt.err (!%p1056_p2)  }
  0x5d   :  { %s1060_s10 = scalar_lea.vmem %s1352_s12, 16  ;;  %p1065_p4 = scmp.lt.s32.totalorder %s1352_s12, %s1348_s9 }
  0x5e   :  { %p1061_p3 = scmp.ne.s32.totalorder %s1352_s12, %s1060_s10  ;;  %p1066_p5 = scmp.lt.s32.totalorder %s1374_s27, %s1060_s10 }
  0x60   :  { %p1067_p6 = por %p1066_p5, %p1065_p4 }
  0x62   :  { %p1068_p7 = pnand %p1067_p6, %p1061_p3 }
  0x64   :  { %1071 = shalt.err (!%p1068_p7)  }
  0x65   :  { %90 = dma.hbm_to_vmem [thread:$0]  %s77_s2, 16, %s1352_s12, [#allocation3 + $0x1] }
  0x66   :  { %s93_s11 = scalar_select %p92_p9, %s1350_s13, 0 }
  0x67   :  { %p112_p10 = scmp.gt.s32.totalorder %s1354_s4, 0  ;;  %p767_p11 = scmp.lt.s32.totalorder %s1354_s4, 255 }
  0x68   :  { %s1555_s11 = smov (!%p760_p8, %s93_s11), 255  ;;  %s1270_s16 = smov [#allocation2 + $0x3]  }
  0x69   :  { %s113_s14 = scalar_select %p112_p10, %s1354_s4, 0 }
  0x6a   :  { %s765_s0 = sshll.u32 %s1555_s11, 4  ;;  %s127_s17 = sshll.u32 %s1270_s16, 4  ;;  %s1405_s17 = int_to_ptr.vmem [resolvable:$true] %s127_s17 }
  0x6b   :  { %s97_s20 = scalar_lea.hbm %s1538_s1, %s765_s0 }
  0x6c   :  { %s1072_s21 = scalar_lea.hbm %s97_s20, 16  ;;  %p1075_p9 = scmp.lt.u32.totalorder %s97_s20, %s1538_s1 }
  0x6d   :  { %p1073_p12 = scmp.ne.s32.totalorder %s97_s20, %s1072_s21  ;;  %p1076_p13 = scmp.lt.u32.totalorder %s1365_s23, %s1072_s21 }
  0x6e   :  { %p1078_p1 = scmp.lt.u32.totalorder %s1072_s21, %s97_s20 }
  0x6f   :  { %p1077_p0 = por %p1076_p13, %p1075_p9 }
  0x71   :  { %p1079_p8 = por %p1078_p1, %p1077_p0 }
  0x73   :  { %p1080_p2 = pnand %p1079_p8, %p1073_p12 }
  0x75   :  { %1083 = shalt.err (!%p1080_p2)  }
  0x76   :  { %s1084_s13 = scalar_lea.vmem %s1356_s15, 16  ;;  %p1089_p4 = scmp.lt.s32.totalorder %s1356_s15, %s1348_s9 }
  0x77   :  { %p1085_p3 = scmp.ne.s32.totalorder %s1356_s15, %s1084_s13  ;;  %p1090_p5 = scmp.lt.s32.totalorder %s1374_s27, %s1084_s13 }
  0x79   :  { %p1091_p6 = por %p1090_p5, %p1089_p4 }
  0x7b   :  { %p1092_p7 = pnand %p1091_p6, %p1085_p3 }
  0x7d   :  { %1095 = shalt.err (!%p1092_p7)  }
  0x7e   :  { %110 = dma.hbm_to_vmem [thread:$0]  %s97_s20, 16, %s1356_s15, [#allocation3 + $0x2] }
  0x7f   :  { %s1557_s14 = smov (!%p767_p11, %s113_s14), 255  ;;  %s1419_s24 = sld [smem:[#allocation5 + $0x4]] }
  0x80   :  { %s772_s25 = sshll.u32 %s1557_s14, 4  ;;  %s1271_s26 = smov [#allocation2 + $0x4]  }
  0x81   :  { %s147_s28 = sshll.u32 %s1271_s26, 4  ;;  %s117_s30 = scalar_lea.hbm %s1538_s1, %s772_s25  ;;  %s1424_s28 = int_to_ptr.vmem [resolvable:$true] %s147_s28 }
  0x82   :  { %s1096_s7 = scalar_lea.hbm %s117_s30, 16  ;;  %p1099_p12 = scmp.lt.u32.totalorder %s117_s30, %s1538_s1 }
  0x83   :  { %p1097_p10 = scmp.ne.s32.totalorder %s117_s30, %s1096_s7  ;;  %p1100_p9 = scmp.lt.u32.totalorder %s1365_s23, %s1096_s7 }
  0x84   :  { %p1102_p11 = scmp.lt.u32.totalorder %s1096_s7, %s117_s30 }
  0x85   :  { %p1101_p13 = por %p1100_p9, %p1099_p12 }
  0x87   :  { %p1103_p0 = por %p1102_p11, %p1101_p13 }
  0x89   :  { %p1104_p1 = pnand %p1103_p0, %p1097_p10 }
  0x8b   :  { %1107 = shalt.err (!%p1104_p1)  }
  0x8c   :  { %s1108_s15 = scalar_lea.vmem %s1405_s17, 16  ;;  %p1113_p2 = scmp.lt.s32.totalorder %s1405_s17, %s1348_s9 }
  0x8d   :  { %p1109_p8 = scmp.ne.s32.totalorder %s1405_s17, %s1108_s15  ;;  %p1114_p3 = scmp.lt.s32.totalorder %s1374_s27, %s1108_s15 }
  0x8f   :  { %p1115_p4 = por %p1114_p3, %p1113_p2 }
  0x91   :  { %p1116_p5 = pnand %p1115_p4, %p1109_p8 }
  0x93   :  { %1119 = shalt.err (!%p1116_p5)  }
  0x94   :  { %130 = dma.hbm_to_vmem [thread:$0]  %s117_s30, 16, %s1405_s17, [#allocation3 + $0x3] }
  0x95   :  { %s1436_s4 = sld [smem:[#allocation5 + $0x5]]  ;;  %s1272_s11 = smov [#allocation2 + $0x5]  }
  0x96   :  { %s167_s14 = sshll.u32 %s1272_s11, 4  ;;  %s1438_s0 = sld [smem:[#allocation5 + $0x6]]  ;;  %s1442_s14 = int_to_ptr.vmem [resolvable:$true] %s167_s14 }
  0x97   :  { %p132_p6 = scmp.gt.s32.totalorder %s1419_s24, 0  ;;  %p774_p7 = scmp.lt.s32.totalorder %s1419_s24, 255 }
  0x98   :  { %s1273_s16 = smov [#allocation2 + $0x6]   ;;  %s1447_s17 = sld [smem:[#allocation5 + $0x7]] }
  0x99   :  { %s1559_s24 = smov (!%p132_p6, %s1419_s24), 0  ;;  %s1445_s18 = sshll.u32 %s1273_s16, 4  ;;  %s1477_s18 = int_to_ptr.vmem [resolvable:$true] %s1445_s18 }
  0x9a   :  { %s1561_s24 = smov (!%p774_p7, %s1559_s24), 255 }
  0x9b   :  { %p152_p10 = scmp.gt.s32.totalorder %s1436_s4, 0  ;;  %s779_s19 = sshll.u32 %s1561_s24, 4 }
  0x9c   :  { %p172_p9 = scmp.gt.s32.totalorder %s1438_s0, 0  ;;  %s137_s22 = scalar_lea.hbm %s1538_s1, %s779_s19 }
  0x9d   :  { %s1120_s12 = scalar_lea.hbm %s137_s22, 16  ;;  %p1123_p0 = scmp.lt.u32.totalorder %s137_s22, %s1538_s1 }
  0x9e   :  { %p1121_p11 = scmp.ne.s32.totalorder %s137_s22, %s1120_s12  ;;  %p1124_p1 = scmp.lt.u32.totalorder %s1365_s23, %s1120_s12 }
  0x9f   :  { %p1126_p2 = scmp.lt.u32.totalorder %s1120_s12, %s137_s22 }
  0xa0   :  { %p1125_p8 = por %p1124_p1, %p1123_p0 }
  0xa2   :  { %p1127_p3 = por %p1126_p2, %p1125_p8 }
  0xa4   :  { %p1128_p4 = pnand %p1127_p3, %p1121_p11 }
  0xa6   :  { %1131 = shalt.err (!%p1128_p4)  }
  0xa7   :  { %s1132_s24 = scalar_lea.vmem %s1424_s28, 16  ;;  %p1137_p6 = scmp.lt.s32.totalorder %s1424_s28, %s1348_s9 }
  0xa8   :  { %p1133_p5 = scmp.ne.s32.totalorder %s1424_s28, %s1132_s24  ;;  %p1138_p7 = scmp.lt.s32.totalorder %s1374_s27, %s1132_s24 }
  0xaa   :  { %p1139_p13 = por %p1138_p7, %p1137_p6 }
  0xac   :  { %p1140_p12 = pnand %p1139_p13, %p1133_p5 }
  0xae   :  { %1143 = shalt.err (!%p1140_p12)  }
  0xaf   :  { %150 = dma.hbm_to_vmem [thread:$0]  %s137_s22, 16, %s1424_s28, [#allocation3 + $0x4] }
  0xb0   :  { %s153_s26 = scalar_select %p152_p10, %s1436_s4, 0 }
  0xb1   :  { %s173_s29 = scalar_select %p172_p9, %s1438_s0, 0 }
  0xb2   :  { %p1544_p11 = scmp.lt.s32.totalorder %s1436_s4, 255  ;;  %p1545_p0 = scmp.lt.s32.totalorder %s1438_s0, 255 }
  0xb4   :  { %s1563_s26 = smov (!%p1544_p11, %s153_s26), 255  ;;  %s1565_s29 = smov (!%p1545_p0, %s173_s29), 255 }
  0xb5   :  { %s786_s2 = sshll.u32 %s1563_s26, 4  ;;  %s793_s10 = sshll.u32 %s1565_s29, 4 }
  0xb6   :  { %s157_s8 = scalar_lea.hbm %s1538_s1, %s786_s2 }
  0xb7   :  { %s1144_s15 = scalar_lea.hbm %s157_s8, 16  ;;  %p1147_p10 = scmp.lt.u32.totalorder %s157_s8, %s1538_s1 }
  0xb8   :  { %p1145_p12 = scmp.ne.s32.totalorder %s157_s8, %s1144_s15  ;;  %p1148_p13 = scmp.lt.u32.totalorder %s1365_s23, %s1144_s15 }
  0xb9   :  { %p1150_p1 = scmp.lt.u32.totalorder %s1144_s15, %s157_s8 }
  0xba   :  { %p1149_p9 = por %p1148_p13, %p1147_p10 }
  0xbc   :  { %p1151_p8 = por %p1150_p1, %p1149_p9 }
  0xbe   :  { %p1152_p2 = pnand %p1151_p8, %p1145_p12 }
  0xc0   :  { %1155 = shalt.err (!%p1152_p2)  }
  0xc1   :  { %s1156_s4 = scalar_lea.vmem %s1442_s14, 16  ;;  %p1161_p4 = scmp.lt.s32.totalorder %s1442_s14, %s1348_s9 }
  0xc2   :  { %p1157_p3 = scmp.ne.s32.totalorder %s1442_s14, %s1156_s4  ;;  %p1162_p5 = scmp.lt.s32.totalorder %s1374_s27, %s1156_s4 }
  0xc4   :  { %p1163_p6 = por %p1162_p5, %p1161_p4 }
  0xc6   :  { %p1164_p7 = pnand %p1163_p6, %p1157_p3 }
  0xc8   :  { %1167 = shalt.err (!%p1164_p7)  }
  0xc9   :  { %170 = dma.hbm_to_vmem [thread:$0]  %s157_s8, 16, %s1442_s14, [#allocation3 + $0x5] }
  0xca   :  { %s177_s19 = scalar_lea.hbm %s1538_s1, %s793_s10  ;;  %p192_p11 = scmp.gt.s32.totalorder %s1447_s17, 0 }
  0xcb   :  { %s1168_s20 = scalar_lea.hbm %s177_s19, 16  ;;  %p1171_p12 = scmp.lt.u32.totalorder %s177_s19, %s1538_s1 }
  0xcc   :  { %p1169_p0 = scmp.ne.s32.totalorder %s177_s19, %s1168_s20  ;;  %p1172_p10 = scmp.lt.u32.totalorder %s1365_s23, %s1168_s20 }
  0xcd   :  { %p1174_p9 = scmp.lt.u32.totalorder %s1168_s20, %s177_s19 }
  0xce   :  { %p1173_p13 = por %p1172_p10, %p1171_p12 }
  0xd0   :  { %p1175_p1 = por %p1174_p9, %p1173_p13 }
  0xd2   :  { %p1176_p8 = pnand %p1175_p1, %p1169_p0 }
  0xd4   :  { %1179 = shalt.err (!%p1176_p8)  }
  0xd5   :  { %s1180_s14 = scalar_lea.vmem %s1477_s18, 16  ;;  %p1185_p3 = scmp.lt.s32.totalorder %s1477_s18, %s1348_s9 }
  0xd6   :  { %p1181_p2 = scmp.ne.s32.totalorder %s1477_s18, %s1180_s14  ;;  %p1186_p4 = scmp.lt.s32.totalorder %s1374_s27, %s1180_s14 }
  0xd8   :  { %p1187_p5 = por %p1186_p4, %p1185_p3 }
  0xda   :  { %p1188_p6 = pnand %p1187_p5, %p1181_p2 }
  0xdc   :  { %1191 = shalt.err (!%p1188_p6)  }
  0xdd   :  { %190 = dma.hbm_to_vmem [thread:$0]  %s177_s19, 16, %s1477_s18, [#allocation3 + $0x6] }
  0xde   :  { %s193_s12 = scalar_select %p192_p11, %s1447_s17, 0 }
  0xdf   :  { %p795_p7 = scmp.lt.s32.totalorder %s1447_s17, 255  ;;  %s1274_s13 = smov [#allocation2 + $0x7]  }
  0xe0   :  { %s207_s25 = sshll.u32 %s1274_s13, 4  ;;  %s208_s25 = int_to_ptr.vmem [resolvable:$true] %s207_s25 }
  0xe1   :  { %s1567_s12 = smov (!%p795_p7, %s193_s12), 255 }
  0xe2   :  { %s800_s24 = sshll.u32 %s1567_s12, 4 }
  0xe3   :  { %s197_s2 = scalar_lea.hbm %s1538_s1, %s800_s24 }
  0xe4   :  { %s1192_s30 = scalar_lea.hbm %s197_s2, 16  ;;  %p1195_p12 = scmp.lt.u32.totalorder %s197_s2, %s1538_s1 }
  0xe5   :  { %p1193_p0 = scmp.ne.s32.totalorder %s197_s2, %s1192_s30  ;;  %p1196_p10 = scmp.lt.u32.totalorder %s1365_s23, %s1192_s30 }
  0xe6   :  { %p1198_p9 = scmp.lt.u32.totalorder %s1192_s30, %s197_s2 }
  0xe7   :  { %p1197_p13 = por %p1196_p10, %p1195_p12 }
  0xe9   :  { %p1199_p11 = por %p1198_p9, %p1197_p13 }
  0xeb   :  { %p1200_p1 = pnand %p1199_p11, %p1193_p0 }
  0xed   :  { %1203 = shalt.err (!%p1200_p1)  }
  0xee   :  { %s1204_s18 = scalar_lea.vmem %s208_s25, 16  ;;  %p1209_p2 = scmp.lt.s32.totalorder %s208_s25, %s1348_s9 }
  0xef   :  { %p1205_p8 = scmp.ne.s32.totalorder %s208_s25, %s1204_s18  ;;  %p1210_p3 = scmp.lt.s32.totalorder %s1374_s27, %s1204_s18 }
  0xf1   :  { %p1211_p4 = por %p1210_p3, %p1209_p2 }
  0xf3   :  { %p1212_p5 = pnand %p1211_p4, %p1205_p8 }
  0xf5   :  { %1215 = shalt.err (!%p1212_p5)  }
  0xf6   :  { %210 = dma.hbm_to_vmem [thread:$0]  %s197_s2, 16, %s208_s25, [#allocation3 + $0x7] }
  0xf7   :  { %1244 = dma.done.wait [#allocation3], 16 }
  0xf8   :  { %1245 = vsyncadd [#allocation3], 4294967280 }
  0xf9   :  { %1246 = dma.done.wait [#allocation3 + $0x1], 16 }
  0xfa   :  { %1247 = vsyncadd [#allocation3 + $0x1], 4294967280 }
  0xfb   :  { %1248 = dma.done.wait [#allocation3 + $0x2], 16 }
  0xfc   :  { %1249 = vsyncadd [#allocation3 + $0x2], 4294967280 }
  0xfd   :  { %1250 = dma.done.wait [#allocation3 + $0x3], 16 }
  0xfe   :  { %1251 = vsyncadd [#allocation3 + $0x3], 4294967280 }
  0xff   :  { %1252 = dma.done.wait [#allocation3 + $0x4], 16 }
 0x100   :  { %1253 = vsyncadd [#allocation3 + $0x4], 4294967280 }
 0x101   :  { %1254 = dma.done.wait [#allocation3 + $0x5], 16 }
 0x102   :  { %1255 = vsyncadd [#allocation3 + $0x5], 4294967280 }
 0x103   :  { %1256 = dma.done.wait [#allocation3 + $0x6], 16 }
 0x104   :  { %1257 = vsyncadd [#allocation3 + $0x6], 4294967280 }
 0x105   :  { %1258 = dma.done.wait [#allocation3 + $0x7], 16 }
 0x106   :  { %1259 = vsyncadd [#allocation3 + $0x7], 4294967280  ;;  %v1275_v0 = vmov 0   ;;  %v890_v1 = vld [vmem:[#allocation6 + $0x4] ss:$8 sps:$4 sm:$0xff]   ;;  %v227_v27 = vld [vmem:[#allocation2] sm:$0xff]  ;;  %v248_v51 = vlaneseq }
 0x107   :  { %378 = vmatprep.mubr.bf16.mxu0 %v1275_v0  ;;  %v892_v2 = vld [vmem:[#allocation6] ss:$8 sps:$4 sm:$0xff]   ;;  %346 = vmatprep.subr.bf16.mxu0 %v890_v1  ;;  %v893_v3 = vld [vmem:[#allocation6 + $0x14] ss:$8 sps:$4 sm:$0xff]   ;;  %v895_v4 = vld [vmem:[#allocation6 + $0x10] ss:$8 sps:$4 sm:$0xff]   ;;  %v228_v29 = vpack.c.bf16 %v227_v27, %v227_v27 }
 0x108   :  { %347 = vmatpush1.bf16.msra.mxu0 %v892_v2  ;;  %v896_v5 = vld [vmem:[#allocation6 + $0x24] ss:$8 sps:$4 sm:$0xff]   ;;  %v898_v6 = vld [vmem:[#allocation6 + $0x20] ss:$8 sps:$4 sm:$0xff]   ;;  %v899_v7 = vld [vmem:[#allocation6 + $0x34] ss:$8 sps:$4 sm:$0xff]  }
 0x109   :  { %348 = vmatprep.subr.bf16.mxu0 %v893_v3  ;;  %v901_v8 = vld [vmem:[#allocation6 + $0x30] ss:$8 sps:$4 sm:$0xff]   ;;  %v902_v9 = vld [vmem:[#allocation6 + $0x44] ss:$8 sps:$4 sm:$0xff]   ;;  %v916_v11 = vld [vmem:[#allocation9] ss:$8 sps:$4 sm:$0xff]  }
 0x10a   :  { %v914_v10 = vld [vmem:[#allocation9 + $0x4] ss:$8 sps:$4 sm:$0xff]   ;;  %v917_v12 = vld [vmem:[#allocation9 + $0x14] ss:$8 sps:$4 sm:$0xff]   ;;  %v904_v13 = vld [vmem:[#allocation6 + $0x40] ss:$8 sps:$4 sm:$0xff]  }
 0x10b   :  { %616 = vmatprep.subr.bf16.mxu1 %v914_v10  ;;  %v919_v14 = vld [vmem:[#allocation9 + $0x10] ss:$8 sps:$4 sm:$0xff]   ;;  %v920_v15 = vld [vmem:[#allocation9 + $0x24] ss:$8 sps:$4 sm:$0xff]   ;;  %v905_v16 = vld [vmem:[#allocation6 + $0x54] ss:$8 sps:$4 sm:$0xff]  }
 0x10c   :  { %349 = vmatpush1.bf16.msra.mxu0 %v895_v4  ;;  %617 = vmatpush1.bf16.msra.mxu1 %v916_v11  ;;  %v907_v17 = vld [vmem:[#allocation6 + $0x50] ss:$8 sps:$4 sm:$0xff]   ;;  %v922_v18 = vld [vmem:[#allocation9 + $0x20] ss:$8 sps:$4 sm:$0xff]   ;;  %v923_v19 = vld [vmem:[#allocation9 + $0x34] ss:$8 sps:$4 sm:$0xff]  }
 0x10d   :  { %350 = vmatprep.subr.bf16.mxu0 %v896_v5  ;;  %618 = vmatprep.subr.bf16.mxu1 %v917_v12  ;;  %v908_v20 = vld [vmem:[#allocation6 + $0x64] ss:$8 sps:$4 sm:$0xff]   ;;  %v910_v21 = vld [vmem:[#allocation6 + $0x60] ss:$8 sps:$4 sm:$0xff]   ;;  %v925_v22 = vld [vmem:[#allocation9 + $0x30] ss:$8 sps:$4 sm:$0xff]  }
 0x10e   :  { %v926_v23 = vld [vmem:[#allocation9 + $0x44] ss:$8 sps:$4 sm:$0xff]   ;;  %v911_v24 = vld [vmem:[#allocation6 + $0x74] ss:$8 sps:$4 sm:$0xff]   ;;  %v928_v25 = vld [vmem:[#allocation9 + $0x40] ss:$8 sps:$4 sm:$0xff]  }
 0x10f   :  { %v913_v26 = vld [vmem:[#allocation6 + $0x70] ss:$8 sps:$4 sm:$0xff]   ;;  %v929_v28 = vld [vmem:[#allocation9 + $0x54] ss:$8 sps:$4 sm:$0xff]   ;;  %v932_v31 = vld [vmem:[#allocation9 + $0x64] ss:$8 sps:$4 sm:$0xff]  }
 0x110   :  { %351 = vmatpush1.bf16.msra.mxu0 %v898_v6  ;;  %619 = vmatpush1.bf16.msra.mxu1 %v919_v14  ;;  %v931_v30 = vld [vmem:[#allocation9 + $0x50] ss:$8 sps:$4 sm:$0xff]   ;;  %v934_v32 = vld [vmem:[#allocation9 + $0x60] ss:$8 sps:$4 sm:$0xff]   ;;  %v935_v33 = vld [vmem:[#allocation9 + $0x74] ss:$8 sps:$4 sm:$0xff]  }
 0x111   :  { %352 = vmatprep.subr.bf16.mxu0 %v899_v7  ;;  %620 = vmatprep.subr.bf16.mxu1 %v920_v15  ;;  %v937_v34 = vld [vmem:[#allocation9 + $0x70] ss:$8 sps:$4 sm:$0xff]   ;;  %v938_v35 = vld [vmem:[#allocation9 + $0x84] ss:$8 sps:$4 sm:$0xff]   ;;  %v940_v36 = vld [vmem:[#allocation9 + $0x80] ss:$8 sps:$4 sm:$0xff]  }
 0x112   :  { %v941_v37 = vld [vmem:[#allocation9 + $0x94] ss:$8 sps:$4 sm:$0xff]   ;;  %v943_v38 = vld [vmem:[#allocation9 + $0x90] ss:$8 sps:$4 sm:$0xff]   ;;  %v944_v39 = vld [vmem:[#allocation9 + $0xa4] ss:$8 sps:$4 sm:$0xff]  }
 0x113   :  { %v946_v40 = vld [vmem:[#allocation9 + $0xa0] ss:$8 sps:$4 sm:$0xff]   ;;  %v947_v41 = vld [vmem:[#allocation9 + $0xb4] ss:$8 sps:$4 sm:$0xff]   ;;  %v949_v42 = vld [vmem:[#allocation9 + $0xb0] ss:$8 sps:$4 sm:$0xff]  }
 0x114   :  { %353 = vmatpush1.bf16.msra.mxu0 %v901_v8  ;;  %621 = vmatpush1.bf16.msra.mxu1 %v922_v18  ;;  %v950_v43 = vld [vmem:[#allocation9 + $0xc4] ss:$8 sps:$4 sm:$0xff]   ;;  %v952_v44 = vld [vmem:[#allocation9 + $0xc0] ss:$8 sps:$4 sm:$0xff]   ;;  %v953_v45 = vld [vmem:[#allocation9 + $0xd4] ss:$8 sps:$4 sm:$0xff]  }
 0x115   :  { %354 = vmatprep.subr.bf16.mxu0 %v902_v9  ;;  %622 = vmatprep.subr.bf16.mxu1 %v923_v19  ;;  %v955_v46 = vld [vmem:[#allocation9 + $0xd0] ss:$8 sps:$4 sm:$0xff]   ;;  %v956_v47 = vld [vmem:[#allocation9 + $0xe4] ss:$8 sps:$4 sm:$0xff]   ;;  %v958_v48 = vld [vmem:[#allocation9 + $0xe0] ss:$8 sps:$4 sm:$0xff]  }
 0x116   :  { %v959_v49 = vld [vmem:[#allocation9 + $0xf4] ss:$8 sps:$4 sm:$0xff]   ;;  %v961_v50 = vld [vmem:[#allocation9 + $0xf0] ss:$8 sps:$4 sm:$0xff]   ;;  %v249_v52 = vshrl.u32 %v248_v51, 7  ;;  %s1276_s27 = smov [#allocation11]  }
 0x117   :  { %v245_v53 = vld [vmem:[%s1540_s3] sm:$0x3]  ;;  %s665_s17 = sshll.u32 %s1276_s27, 4  ;;  %s666_s17 = int_to_ptr.vmem [resolvable:$true] %s665_s17 }
 0x118   :  { %355 = vmatpush1.bf16.msra.mxu0 %v904_v13  ;;  %623 = vmatpush1.bf16.msra.mxu1 %v925_v22  ;;  %v246_v54 = vunpack.c.l.bf16 %v245_v53  ;;  %v250_v55 = vsub.s32 0, %v249_v52  ;;  %v254_v56 = vsub.s32 2, %v249_v52  ;;  %v435_v15 = vld [vmem:[%s1542_s5] sm:$0x3]  ;;  %s1216_s10 = scalar_lea.vmem %s666_s17, 256  ;;  %p1221_p7 = scmp.lt.s32.totalorder %s666_s17, %s666_s17 }
 0x119   :  { %356 = vmatprep.subr.bf16.mxu0 %v905_v16  ;;  %624 = vmatprep.subr.bf16.mxu1 %v926_v23  ;;  %v436_v16 = vunpack.c.l.bf16 %v435_v15  ;;  %p1217_p6 = scmp.ne.s32.totalorder %s666_s17, %s1216_s10  ;;  %p1222_p0 = scmp.lt.s32.totalorder %s1216_s10, %s1216_s10 }
 0x11a   :  { %v251_v57 = vrot.slane %v246_v54, %v250_v55  ;;  %v255_v58 = vrot.slane %v246_v54, %v254_v56 }
 0x11b   :  { %v445_v18 = vrot.slane %v436_v16, %v254_v56  ;;  %p1223_p12 = por %p1222_p0, %p1221_p7 }
 0x11c   :  { %357 = vmatpush1.bf16.msra.mxu0 %v907_v17  ;;  %625 = vmatpush1.bf16.msra.mxu1 %v928_v25  ;;  %v261_v59 = vrot.slane %v251_v57, %v250_v55  ;;  %v265_v60 = vrot.slane %v255_v58, %v250_v55  ;;  %v441_v17 = vrot.slane %v436_v16, %v250_v55 }
 0x11d   :  { %358 = vmatprep.subr.bf16.mxu0 %v908_v20  ;;  %626 = vmatprep.subr.bf16.mxu1 %v929_v28  ;;  %v455_v20 = vrot.slane %v445_v18, %v250_v55  ;;  %p1224_p10 = pnand %p1223_p12, %p1217_p6 }
 0x11e   :  { %v451_v19 = vrot.slane %v441_v17, %v250_v55 }
 0x120   :  { %359 = vmatpush1.bf16.msra.mxu0 %v910_v21  ;;  %627 = vmatpush1.bf16.msra.mxu1 %v931_v30 }
 0x121   :  { %360 = vmatprep.subr.bf16.mxu0 %v911_v24  ;;  %628 = vmatprep.subr.bf16.mxu1 %v932_v31 }
 0x124   :  { %361 = vmatpush1.bf16.msra.mxu0 %v913_v26  ;;  %629 = vmatpush1.bf16.msra.mxu1 %v934_v32 }
 0x125   :  { %630 = vmatprep.subr.bf16.mxu1 %v935_v33 }
 0x127   :  { %379 = vmatmul.mubr.bf16.vlgmr.msra.gmra.mrb[0].mxu0 %v228_v29 }
 0x128   :  { %631 = vmatpush1.bf16.msra.mxu1 %v937_v34 }
 0x129   :  { %632 = vmatprep.subr.bf16.mxu1 %v938_v35 }
 0x12c   :  { %633 = vmatpush1.bf16.msra.mxu1 %v940_v36 }
 0x12d   :  { %634 = vmatprep.subr.bf16.mxu1 %v941_v37 }
 0x130   :  { %635 = vmatpush1.bf16.msra.mxu1 %v943_v38 }
 0x131   :  { %636 = vmatprep.subr.bf16.mxu1 %v944_v39 }
 0x134   :  { %637 = vmatpush1.bf16.msra.mxu1 %v946_v40 }
 0x135   :  { %638 = vmatprep.subr.bf16.mxu1 %v947_v41 }
 0x138   :  { %639 = vmatpush1.bf16.msra.mxu1 %v949_v42 }
 0x139   :  { %640 = vmatprep.subr.bf16.mxu1 %v950_v43 }
 0x13c   :  { %641 = vmatpush1.bf16.msra.mxu1 %v952_v44 }
 0x13d   :  { %642 = vmatprep.subr.bf16.mxu1 %v953_v45 }
 0x140   :  { %643 = vmatpush1.bf16.msra.mxu1 %v955_v46 }
 0x141   :  { %644 = vmatprep.subr.bf16.mxu1 %v956_v47 }
 0x144   :  { %645 = vmatpush1.bf16.msra.mxu1 %v958_v48 }
 0x145   :  { %646 = vmatprep.subr.bf16.mxu1 %v959_v49 }
 0x148   :  { %647 = vmatpush1.bf16.msra.mxu1 %v961_v50 }
 0x1fa   :  { %v380_v61 = vpop.f32.mrb[0].mxu0 }
 0x1fb   :  { %v381_v62 = vadd.f32 %v380_v61, %v261_v59  ;;  %v382_v63 = vpop.f32.mrb[1].mxu0 }
 0x1fc   :  { %v383_v0 = vadd.f32 %v382_v63, %v265_v60  ;;  %v384_v1 = vpop.f32.mrb[2].mxu0 }
 0x1fd   :  { %v817_v2 = vmul.f32 -1.442695, %v381_v62  ;;  %v385_v3 = vpop.f32.mrb[3].mxu0 }
 0x1fe   :  { %v818_v4 = vmul.f32 -1.442695, %v383_v0 }
 0x1ff   :  { %962 = vpow2.f32 %v817_v2 }
 0x200   :  { %964 = vpow2.f32 %v818_v4 }
 0x209   :  { %v963_v5 = vpop.eup %962 }
 0x20a   :  { %v965_v6 = vpop.eup %964  ;;  %v393_v7 = vadd.f32 1.0, %v963_v5 }
 0x20b   :  { %v394_v8 = vadd.f32 1.0, %v965_v6 }
 0x20c   :  { %966 = vrcp.f32 %v393_v7 }
 0x20d   :  { %968 = vrcp.f32 %v394_v8 }
 0x216   :  { %v967_v9 = vpop.eup %966 }
 0x217   :  { %v969_v10 = vpop.eup %968  ;;  %v399_v11 = vmul.f32 %v967_v9, %v381_v62 }
 0x218   :  { %v400_v12 = vmul.f32 %v969_v10, %v383_v0 }
 0x219   :  { %v401_v14 = vpack.c.bf16 %v399_v11, %v399_v11 }
 0x21a   :  { %v402_v13 = vpack.c.bf16 %v400_v12, %v400_v12 }
 0x21c   :  { %648 = vmatprep.mubr.bf16.mxu1 %v402_v13 }
 0x21d   :  { %649 = vmatmul.mubr.bf16.vlgmr.msra.gmra.mrb[0].mxu1 %v401_v14 }
 0x2f0   :  { %v650_v21 = vpop.f32.mrb[0].mxu1 }
 0x2f1   :  { %v651_v22 = vadd.f32 %v650_v21, %v451_v19  ;;  %v652_v23 = vpop.f32.mrb[1].mxu1 }
 0x2f2   :  { %v653_v24 = vadd.f32 %v652_v23, %v455_v20  ;;  %v654_v25 = vpop.f32.mrb[2].mxu1 }
 0x2f3   :  { %657 = vst [vmem:[#allocation11] sm:$0xff] %v651_v22  ;;  %v655_v26 = vpop.f32.mrb[3].mxu1 }
 0x2f4   :  { %658 = vst [vmem:[#allocation11 + $0x8] sm:$0xff] %v653_v24 }
 0x2f5   :  { %1227 = shalt.err (!%p1224_p10)
}
 0x2f6   :  { %s1228_s11 = scalar_lea.hbm %s1543_s6, 256 }
 0x2f7   :  { %p1229_p13 = scmp.ne.s32.totalorder %s1543_s6, %s1228_s11  ;;  %p1232_p9 = scmp.lt.u32.totalorder %s1228_s11, %s1543_s6 }
 0x2f9   :  { %p1234_p11 = pnand %p1232_p9, %p1229_p13 }
 0x2fb   :  { %1237 = shalt.err (!%p1234_p11)
}
 0x2fc   :  { %668 = dma.vmem_to_hbm [thread:$0]  %s666_s17, 256, %s1543_s6, [#allocation8]  }
 0x2fd   :  { %1260 = dma.done.wait [#allocation8], 256  }
 0x2fe   :  { %1261 = vsyncadd [#allocation8], 4294967040 }
 0x2ff   :  { %672 = vsyncpa [#allocation7], 1 }
 0x300   :  { %673 = vsyncpa [#allocation10], 1 }
 0x301   :  { %674 = vsyncpa [#allocation8], 1 }
 0x302   :  { %675 = vsyncmov [#allocation3] }
 0x305   :  { %s676_s21 = vpop.sfrf %675 }
 0x306   :  { %p851_p1 = scmp.ne.s32.totalorder %s676_s21, 0 }
 0x308   :  { %680 = shalt.err (%p851_p1)  }
 0x309   :  { %682 = vsyncmov [#allocation3 + $0x1] }
 0x30c   :  { %s683_s22 = vpop.sfrf %682 }
 0x30d   :  { %p852_p8 = scmp.ne.s32.totalorder %s683_s22, 0 }
 0x30f   :  { %687 = shalt.err (%p852_p8)  }
 0x310   :  { %689 = vsyncmov [#allocation3 + $0x2] }
 0x313   :  { %s690_s14 = vpop.sfrf %689 }
 0x314   :  { %p853_p2 = scmp.ne.s32.totalorder %s690_s14, 0 }
 0x316   :  { %694 = shalt.err (%p853_p2)  }
 0x317   :  { %696 = vsyncmov [#allocation3 + $0x3] }
 0x31a   :  { %s697_s12 = vpop.sfrf %696 }
 0x31b   :  { %p854_p3 = scmp.ne.s32.totalorder %s697_s12, 0 }
 0x31d   :  { %701 = shalt.err (%p854_p3)  }
 0x31e   :  { %703 = vsyncmov [#allocation3 + $0x4] }
 0x321   :  { %s704_s6 = vpop.sfrf %703 }
 0x322   :  { %p855_p4 = scmp.ne.s32.totalorder %s704_s6, 0 }
 0x324   :  { %708 = shalt.err (%p855_p4)  }
 0x325   :  { %710 = vsyncmov [#allocation3 + $0x5] }
 0x328   :  { %s711_s13 = vpop.sfrf %710 }
 0x329   :  { %p856_p5 = scmp.ne.s32.totalorder %s711_s13, 0 }
 0x32b   :  { %715 = shalt.err (%p856_p5)  }
 0x32c   :  { %717 = vsyncmov [#allocation3 + $0x6] }
 0x32f   :  { %s718_s25 = vpop.sfrf %717 }
 0x330   :  { %p857_p6 = scmp.ne.s32.totalorder %s718_s25, 0 }
 0x332   :  { %722 = shalt.err (%p857_p6)  }
 0x333   :  { %724 = vsyncmov [#allocation3 + $0x7] }
 0x336   :  { %s725_s24 = vpop.sfrf %724 }
 0x337   :  { %p858_p7 = scmp.ne.s32.totalorder %s725_s24, 0 }
 0x339   :  { %729 = shalt.err (%p858_p7)  }

</bundles_post_ra>
